<compile_context>
chip_gen: v6e
topology: v6e:2x2x1
jax: 0.10.0
libtpu: 0.0.40
codegen_flags: <defaults>
</compile_context>

<pallas_src>
import functools
import math

import jax
import jax.numpy as jnp
from jax.experimental import pallas as pl
from jax.experimental.pallas import tpu as pltpu


# ---------------------------------------------------------------------------
# Kernel
# ---------------------------------------------------------------------------
def _sab_kernel(xq_ref, xk_ref, wq_ref, bq_ref, wkv_ref, bkv_ref, o_ref,
                q_scr, m_scr, acc_scr,
                *, cmid, cout, hw_k, key_tile, mask_keys, mm_dtype,
                softmax_dtype):
    """One grid step == one batch element x one query tile x one key tile.

    xq_ref : (1, Cq, tq)        query tokens (channel-major, lane-dense)
    xk_ref : (1, Ck, tk)        key/value tokens for the current key tile
    wq_ref : (Cmid, Cq)         scale-folded 1x1-conv weight (query)
    bq_ref : (Cmid, 1)          scale-folded bias (query)
    wkv_ref: (Cmid+Cout+1, Ck)  fused key | value | zeros weights
    bkv_ref: (Cmid+Cout+1, 1)   fused key | value | one   biases
    o_ref  : (1, Cout, tq)      output tile (written on the last key step)
    q_scr  : (Cmid, tq)         projected query tile, mm_dtype
    m_scr  : (1, tq)            running row-max (f32)
    acc_scr: (Cout+1, tq)       online ctx accumulator; row Cout is the denom
    """
    ki = pl.program_id(2)
    nk = pl.num_programs(2)

    @pl.when(ki == 0)
    def _init():
        xq = xq_ref[0].astype(jnp.float32)                           # (Cq, tq)
        q = jnp.dot(wq_ref[...], xq,
                    preferred_element_type=jnp.float32) + bq_ref[...]
        q_scr[...] = q.astype(mm_dtype)
        m_scr[...] = jnp.full(m_scr.shape, -jnp.inf, jnp.float32)
        acc_scr[...] = jnp.zeros(acc_scr.shape, jnp.float32)

    # Fused key / value / ones projection for this key tile (one matmul),
    # then a single downcast shared by both slices (slices are not views).
    xk = xk_ref[0].astype(jnp.float32)                               # (Ck, tk)
    kvo = jnp.dot(wkv_ref[...], xk,
                  preferred_element_type=jnp.float32) + bkv_ref[...]
    kvo = kvo.astype(mm_dtype)                                       # (Cmid+Cout+1, tk)
    k = kvo[:cmid]                                                   # (Cmid, tk)
    v1 = kvo[cmid:]                                                  # (Cout+1, tk); last row == 1

    # sim[kj, qi] = sum_c k[c, kj] * q[c, qi]  (norm scale folded into wq/bq).
    # Queries stay in lanes -> no transposes anywhere in the online update.
    sim = jax.lax.dot_general(
        k, q_scr[...],
        dimension_numbers=(((0,), (0,)), ((), ())),
        preferred_element_type=jnp.float32)                          # (tk, tq)

    if mask_keys:
        kidx = jax.lax.broadcasted_iota(jnp.int32, (key_tile, 1), 0) + ki * key_tile
        sim = jnp.where(kidx < hw_k, sim, -jnp.inf)

    m_prev = m_scr[...]                                              # (1, tq) f32
    m_new = jnp.maximum(m_prev, jnp.max(sim, axis=0, keepdims=True)) # (1, tq) f32
    alpha = jnp.exp(m_prev - m_new)                                  # (1, tq) f32
    # Row-max subtraction in f32, exp in softmax_dtype (bf16 on v6e/v7x).
    p = jnp.exp((sim - m_new).astype(softmax_dtype))                 # (tk, tq)

    # ctx[c, qi] = sum_k v1[c, k] * p[k, qi]; row `cout` is the denominator.
    ctx = jax.lax.dot_general(
        v1, p.astype(mm_dtype),
        dimension_numbers=(((1,), (0,)), ((), ())),
        preferred_element_type=jnp.float32)                          # (Cout+1, tq)

    acc_scr[...] = alpha * acc_scr[...] + ctx
    m_scr[...] = m_new

    @pl.when(ki == nk - 1)
    def _finalize():
        acc = acc_scr[...]
        inv = pl.reciprocal(acc[cout:cout + 1], approx=True)         # (1, tq)
        o_ref[0] = (acc[:cout] * inv).astype(o_ref.dtype)


# ---------------------------------------------------------------------------
# Wrapper
# ---------------------------------------------------------------------------
def _tpu_generation():
    try:
        kind = jax.devices()[0].device_kind.lower()
    except Exception:
        return 0
    for g in (7, 6, 5, 4):
        if f"v{g}" in kind:
            return g
    return 0


def _vmem_capacity_bytes(gen):
    try:
        cap = int(pltpu.get_tpu_info().vmem_capacity_bytes)
        if cap > 0:
            return cap
    except Exception:
        pass
    # v7x: 64 MiB per TensorCore; v5e/v6e: 128 MiB.
    return (64 if gen >= 7 else 128) * (1 << 20)


def self_attention_block(query_feats, key_feats, params, *, channels,
                         matmul_norm=True, mm_dtype=jnp.bfloat16,
                         query_tile=None, key_tile=None,
                         softmax_dtype=None, vmem_limit_bytes=None):
    """query_feats, key_feats: NCHW arrays. Returns NCHW output."""
    B, cq_in, H, W = query_feats.shape
    Bk, ck_in, Hk, Wk = key_feats.shape
    assert B == Bk and (H, W) == (Hk, Wk), "no downsample modules in this config"
    HW = H * W

    wq, bq = params["wq"], params["bq"]   # (channels, Cq_in), (channels,)
    wk, bk = params["wk"], params["bk"]   # (channels, Ck_in), (channels,)
    wv, bv = params["wv"], params["bv"]   # (out_channels, Ck_in), (out_channels,)
    cmid, cout = wq.shape[0], wv.shape[0]

    gen = _tpu_generation()
    vmem_cap = _vmem_capacity_bytes(gen)
    mm_dtype = jnp.dtype(mm_dtype)
    if softmax_dtype is None:
        # bf16 exp only where the EUP supports it (v6e / v7x); f32 elsewhere.
        softmax_dtype = jnp.bfloat16 if gen >= 6 else jnp.float32
    softmax_dtype = jnp.dtype(softmax_dtype)

    # ----------------- VMEM-budget-driven tile selection -------------------
    p_bytes = softmax_dtype.itemsize
    budget = int(0.40 * vmem_cap)                   # target working set
    bytes_per_sim_elem = 4 + p_bytes + 4            # sim f32 + p + temporaries
    max_tile = int(math.sqrt(max(budget, 1) / bytes_per_sim_elem))
    max_tile = max(128, min(2048, (max_tile // 128) * 128))

    def _pick(hw, requested):
        if requested is not None:
            t = int(requested)
            assert t >= hw or t % 128 == 0, \
                "explicit tiles must be >= HW or a multiple of 128"
            return hw if t >= hw else t
        return hw if hw <= max_tile else max_tile

    tq = _pick(HW, query_tile)
    tk = _pick(HW, key_tile)

    # Feed both v7x TensorCores when the parallel grid would otherwise be (1,1).
    if B == 1 and gen >= 7 and query_tile is None and tq == HW and HW >= 256:
        tq = max(128, ((HW + 1) // 2 + 127) // 128 * 128)

    hw_q_pad = -(-HW // tq) * tq
    hw_k_pad = -(-HW // tk) * tk
    mask_keys = hw_k_pad != HW

    # Fold the matmul_norm scale into the query projection (zero in-kernel cost).
    scale = float(channels) ** (-0.5) if matmul_norm else 1.0
    wq_s = (jnp.asarray(wq, jnp.float32) * scale)
    bq_s = (jnp.asarray(bq, jnp.float32) * scale).reshape(cmid, 1)

    # Fuse key + value projections; append a zero-weight / one-bias row so the
    # same matmul also produces a row of ones (-> softmax denominator via the
    # PV matmul, already in (1, tq) lane layout).
    wkv = jnp.concatenate(
        [wk, wv, jnp.zeros((1, ck_in), wk.dtype)], axis=0).astype(jnp.float32)
    bkv = jnp.concatenate(
        [bk, bv, jnp.ones((1,), bk.dtype)], axis=0
    ).reshape(cmid + cout + 1, 1).astype(jnp.float32)

    # NCHW -> channel-major tokens [B, C, HW] (pure reshape, no transpose);
    # pad HW to tile multiples with zeros (masked out in-kernel for keys,
    # sliced away for queries).
    xq = query_feats.reshape(B, cq_in, HW)
    xk = key_feats.reshape(B, ck_in, HW)
    if hw_q_pad != HW:
        xq = jnp.pad(xq, ((0, 0), (0, 0), (0, hw_q_pad - HW)))
    if hw_k_pad != HW:
        xk = jnp.pad(xk, ((0, 0), (0, 0), (0, hw_k_pad - HW)))

    # Always set the scoped VMEM limit from a working-set estimate.
    if vmem_limit_bytes is None:
        in_bytes = jnp.dtype(query_feats.dtype).itemsize
        ws = (tq * tk * (4 + p_bytes)                              # sim + p
              + tk * (cmid + cout + 1) * (4 + mm_dtype.itemsize)   # kvo f32 + cast
              + tq * ((cout + 1) * 4 + cmid * mm_dtype.itemsize + 32)  # scratch
              + 2 * (cq_in * tq + ck_in * tk) * in_bytes           # dbl-buffered inputs
              + 2 * cout * tq * in_bytes                           # dbl-buffered output
              + (1 << 20))                                         # weights + slack
        vmem_limit_bytes = int(min(0.85 * vmem_cap, max(32 << 20, 2 * ws)))

    kernel = functools.partial(
        _sab_kernel, cmid=cmid, cout=cout, hw_k=HW, key_tile=tk,
        mask_keys=mask_keys, mm_dtype=mm_dtype, softmax_dtype=softmax_dtype)

    out = pl.pallas_call(
        kernel,
        out_shape=jax.ShapeDtypeStruct((B, cout, hw_q_pad), query_feats.dtype),
        grid_spec=pltpu.PrefetchScalarGridSpec(
            num_scalar_prefetch=0,
            grid=(B, hw_q_pad // tq, hw_k_pad // tk),
            in_specs=[
                pl.BlockSpec((1, cq_in, tq), lambda b, qi, ki: (b, 0, qi)),
                pl.BlockSpec((1, ck_in, tk), lambda b, qi, ki: (b, 0, ki)),
                pl.BlockSpec((cmid, cq_in), lambda b, qi, ki: (0, 0)),
                pl.BlockSpec((cmid, 1), lambda b, qi, ki: (0, 0)),
                pl.BlockSpec((cmid + cout + 1, ck_in), lambda b, qi, ki: (0, 0)),
                pl.BlockSpec((cmid + cout + 1, 1), lambda b, qi, ki: (0, 0)),
            ],
            out_specs=pl.BlockSpec((1, cout, tq), lambda b, qi, ki: (b, 0, qi)),
            scratch_shapes=[
                pltpu.VMEM((cmid, tq), mm_dtype),          # projected query tile
                pltpu.VMEM((1, tq), jnp.float32),          # running row-max
                pltpu.VMEM((cout + 1, tq), jnp.float32),   # ctx accumulator + denom
            ],
        ),
        compiler_params=pltpu.CompilerParams(
            dimension_semantics=("parallel", "parallel", "arbitrary"),
            vmem_limit_bytes=int(vmem_limit_bytes)),
    )(xq, xk, wq_s, bq_s, wkv, bkv)

    if hw_q_pad != HW:
        out = out[:, :, :HW]
    # [B, Cout, HW] is already NCHW-ordered: just reshape back.
    return out.reshape(B, cout, H, W)


# ---------------------------------------------------------------------------
# Pure-JAX reference (mirrors the PyTorch forward exactly)
# ---------------------------------------------------------------------------
def _reference(query_feats, key_feats, params, *, channels, matmul_norm=True):
    B, _, H, W = query_feats.shape
    HW = H * W

    def conv1x1(x, w, b):  # x: NCHW, w: (Cout, Cin), b: (Cout,)
        xf = x.reshape(B, x.shape[1], HW)                            # (B, Cin, HW)
        return jnp.einsum("oc,bch->boh", w, xf) + b[None, :, None]   # (B, Cout, HW)

    query = conv1x1(query_feats, params["wq"], params["bq"])         # (B, C, HW)
    key = conv1x1(key_feats, params["wk"], params["bk"])             # (B, C, HW)
    value = conv1x1(key_feats, params["wv"], params["bv"])           # (B, Co, HW)

    sim = jnp.einsum("bcq,bck->bqk", query, key)
    if matmul_norm:
        sim = (channels ** (-0.5)) * sim
    sim = jax.nn.softmax(sim, axis=-1)
    ctx = jnp.einsum("bqk,bck->bcq", sim, value)                     # (B, Co, HW)
    return ctx.reshape(B, -1, H, W)


if __name__ == "__main__":
    # Small, module-consistent shapes.
    B, C_IN, H, W = 2, 4, 8, 8
    CHANNELS, OUT_CHANNELS = 32, 32

    key = jax.random.PRNGKey(0)
    kq, kk, k1, k2, k3, k4, k5, k6 = jax.random.split(key, 8)

    query_feats = jax.random.normal(kq, (B, C_IN, H, W), dtype=jnp.float32)
    key_feats = jax.random.normal(kk, (B, C_IN, H, W), dtype=jnp.float32)

    # 1x1-conv parameters in PyTorch orientation: weight (Cout, Cin), bias (Cout,).
    params = {
        "wq": 0.1 * jax.random.normal(k1, (CHANNELS, C_IN), dtype=jnp.float32),
        "bq": 0.01 * jax.random.normal(k2, (CHANNELS,), dtype=jnp.float32),
        "wk": 0.1 * jax.random.normal(k3, (CHANNELS, C_IN), dtype=jnp.float32),
        "bk": 0.01 * jax.random.normal(k4, (CHANNELS,), dtype=jnp.float32),
        "wv": 0.1 * jax.random.normal(k5, (OUT_CHANNELS, C_IN), dtype=jnp.float32),
        "bv": 0.01 * jax.random.normal(k6, (OUT_CHANNELS,), dtype=jnp.float32),
    }

    out = self_attention_block(query_feats, key_feats, params,
                               channels=CHANNELS, matmul_norm=True)
    out = jax.block_until_ready(out)

    ref = _reference(query_feats, key_feats, params,
                     channels=CHANNELS, matmul_norm=True)

    assert out.shape == (B, OUT_CHANNELS, H, W), out.shape
    # bf16 matmul/softmax operands + approx reciprocal -> ~1e-3 level differences.
    max_err = float(jnp.max(jnp.abs(out - ref)))
    assert jnp.allclose(out, ref, atol=2e-2, rtol=2e-2), max_err

    # TODO(synk): query_downsample / key_downsample submodules and the
    # with_out / ConvModule(norm+act) projection variants are config choices
    # not exercised by this instantiation and are not implemented in-kernel.

    print("KERNEL_OK")
</pallas_src>

<mosaic_0001>
module attributes {stable_mosaic.version = 11 : i64} {
  func.func @_sab_kernel(%arg0: i32, %arg1: i32, %arg2: i32, %arg3: memref<1x4x64xf32, #tpu.memory_space<vmem>>, %arg4: memref<1x4x64xf32, #tpu.memory_space<vmem>>, %arg5: memref<32x4xf32, #tpu.memory_space<vmem>>, %arg6: memref<32x1xf32, #tpu.memory_space<vmem>>, %arg7: memref<65x4xf32, #tpu.memory_space<vmem>>, %arg8: memref<65x1xf32, #tpu.memory_space<vmem>>, %arg9: memref<1x32x64xf32, #tpu.memory_space<vmem>>, %arg10: memref<32x64xbf16, #tpu.memory_space<vmem>>, %arg11: memref<1x64xf32, #tpu.memory_space<vmem>>, %arg12: memref<33x64xf32, #tpu.memory_space<vmem>>) attributes {dimension_semantics = [#tpu.dimension_semantics<parallel>, #tpu.dimension_semantics<parallel>, #tpu.dimension_semantics<arbitrary>], iteration_bounds = array<i64: 2, 1, 1>, scalar_prefetch = 0 : i64, scratch_operands = 3 : i64, tpu.core_type = #tpu.core_type<tc>, window_params = [{transform_indices = @transform_0, window_bounds = array<i64: 1, 4, 64>}, {transform_indices = @transform_1, window_bounds = array<i64: 1, 4, 64>}, {pipeline_mode = #tpu.pipeline_mode<synchronous>, transform_indices = @transform_2, window_bounds = array<i64: 32, 4>}, {pipeline_mode = #tpu.pipeline_mode<synchronous>, transform_indices = @transform_3, window_bounds = array<i64: 32, 1>}, {pipeline_mode = #tpu.pipeline_mode<synchronous>, transform_indices = @transform_4, window_bounds = array<i64: 65, 4>}, {pipeline_mode = #tpu.pipeline_mode<synchronous>, transform_indices = @transform_5, window_bounds = array<i64: 65, 1>}, {transform_indices = @transform_6, window_bounds = array<i64: 1, 32, 64>}]} {
    %c0_i32 = arith.constant 0 : i32
    %0 = arith.cmpi eq, %arg2, %c0_i32 : i32
    %1 = arith.extui %0 : i1 to i32
    %c0_i32_0 = arith.constant 0 : i32
    %2 = arith.cmpi ne, %1, %c0_i32_0 : i32
    scf.if %2 {
      %c0_22 = arith.constant 0 : index
      %c0_23 = arith.constant 0 : index
      %c0_24 = arith.constant 0 : index
      %35 = vector.load %arg3[%c0_22, %c0_23, %c0_24] : memref<1x4x64xf32, #tpu.memory_space<vmem>>, vector<1x4x64xf32>
      %36 = vector.shape_cast %35 : vector<1x4x64xf32> to vector<4x64xf32>
      %c0_25 = arith.constant 0 : index
      %c0_26 = arith.constant 0 : index
      %37 = vector.load %arg5[%c0_25, %c0_26] : memref<32x4xf32, #tpu.memory_space<vmem>>, vector<32x4xf32>
      %cst_27 = arith.constant dense<0.000000e+00> : vector<32x64xf32>
      %38 = tpu.matmul %37, %36, %cst_27 {dimension_numbers = #tpu.dot_dimension_numbers<[1], [0], [0], [1], [0, 0, 1, 1], [], []>} : vector<32x4xf32>, vector<4x64xf32>, vector<32x64xf32> -> vector<32x64xf32>
      %c0_28 = arith.constant 0 : index
      %c0_29 = arith.constant 0 : index
      %39 = vector.load %arg6[%c0_28, %c0_29] : memref<32x1xf32, #tpu.memory_space<vmem>>, vector<32x1xf32>
      %40 = vector.broadcast %39 : vector<32x1xf32> to vector<32x64xf32>
      %41 = arith.addf %38, %40 : vector<32x64xf32>
      %42 = arith.truncf %41 : vector<32x64xf32> to vector<32x64xbf16>
      %c0_30 = arith.constant 0 : index
      %c0_31 = arith.constant 0 : index
      %43 = vector.load %arg10[%c0_30, %c0_31] : memref<32x64xbf16, #tpu.memory_space<vmem>>, vector<32x64xbf16>
      tpu.vector_store %arg10[%c0_30, %c0_31], %42 {strides = array<i32>} : memref<32x64xbf16, #tpu.memory_space<vmem>>, vector<32x64xbf16>,
      %cst_32 = arith.constant 0xFF800000 : f32
      %44 = vector.broadcast %cst_32 : f32 to vector<1x64xf32>
      %c0_33 = arith.constant 0 : index
      %c0_34 = arith.constant 0 : index
      %45 = vector.load %arg11[%c0_33, %c0_34] : memref<1x64xf32, #tpu.memory_space<vmem>>, vector<1x64xf32>
      tpu.vector_store %arg11[%c0_33, %c0_34], %44 {strides = array<i32>} : memref<1x64xf32, #tpu.memory_space<vmem>>, vector<1x64xf32>,
      %cst_35 = arith.constant 0.000000e+00 : f32
      %46 = vector.broadcast %cst_35 : f32 to vector<33x64xf32>
      %c0_36 = arith.constant 0 : index
      %c0_37 = arith.constant 0 : index
      %47 = vector.load %arg12[%c0_36, %c0_37] : memref<33x64xf32, #tpu.memory_space<vmem>>, vector<33x64xf32>
      tpu.vector_store %arg12[%c0_36, %c0_37], %46 {strides = array<i32>} : memref<33x64xf32, #tpu.memory_space<vmem>>, vector<33x64xf32>,
    } else {
    }
    %c0 = arith.constant 0 : index
    %c0_1 = arith.constant 0 : index
    %c0_2 = arith.constant 0 : index
    %3 = vector.load %arg4[%c0, %c0_1, %c0_2] : memref<1x4x64xf32, #tpu.memory_space<vmem>>, vector<1x4x64xf32>
    %4 = vector.shape_cast %3 : vector<1x4x64xf32> to vector<4x64xf32>
    %c0_3 = arith.constant 0 : index
    %c0_4 = arith.constant 0 : index
    %5 = vector.load %arg7[%c0_3, %c0_4] : memref<65x4xf32, #tpu.memory_space<vmem>>, vector<65x4xf32>
    %cst = arith.constant dense<0.000000e+00> : vector<65x64xf32>
    %6 = tpu.matmul %5, %4, %cst {dimension_numbers = #tpu.dot_dimension_numbers<[1], [0], [0], [1], [0, 0, 1, 1], [], []>} : vector<65x4xf32>, vector<4x64xf32>, vector<65x64xf32> -> vector<65x64xf32>
    %c0_5 = arith.constant 0 : index
    %c0_6 = arith.constant 0 : index
    %7 = vector.load %arg8[%c0_5, %c0_6] : memref<65x1xf32, #tpu.memory_space<vmem>>, vector<65x1xf32>
    %8 = vector.broadcast %7 : vector<65x1xf32> to vector<65x64xf32>
    %9 = arith.addf %6, %8 : vector<65x64xf32>
    %10 = arith.truncf %9 : vector<65x64xf32> to vector<65x64xbf16>
    %11 = vector.extract_strided_slice %10 {offsets = [0, 0], sizes = [32, 64], strides = [1, 1]} : vector<65x64xbf16> to vector<32x64xbf16>
    %12 = vector.extract_strided_slice %10 {offsets = [32, 0], sizes = [33, 64], strides = [1, 1]} : vector<65x64xbf16> to vector<33x64xbf16>
    %c0_7 = arith.constant 0 : index
    %c0_8 = arith.constant 0 : index
    %13 = vector.load %arg10[%c0_7, %c0_8] : memref<32x64xbf16, #tpu.memory_space<vmem>>, vector<32x64xbf16>
    %cst_9 = arith.constant dense<0.000000e+00> : vector<64x64xf32>
    %14 = tpu.matmul %11, %13, %cst_9 {dimension_numbers = #tpu.dot_dimension_numbers<[0], [0], [1], [1], [0, 1, 1, 1], [], []>} : vector<32x64xbf16>, vector<32x64xbf16>, vector<64x64xf32> -> vector<64x64xf32>
    %c0_10 = arith.constant 0 : index
    %c0_11 = arith.constant 0 : index
    %15 = vector.load %arg11[%c0_10, %c0_11] : memref<1x64xf32, #tpu.memory_space<vmem>>, vector<1x64xf32>
    %cst_12 = arith.constant dense<0xFF800000> : vector<64xf32>
    %16 = vector.multi_reduction <maximumf>, %14, %cst_12 [0] : vector<64x64xf32> to vector<64xf32>
    %17 = vector.shape_cast %16 : vector<64xf32> to vector<1x64xf32>
    %18 = arith.maximumf %15, %17 : vector<1x64xf32>
    %19 = arith.subf %15, %18 : vector<1x64xf32>
    %20 = math.exp %19 : vector<1x64xf32>
    %21 = vector.broadcast %18 : vector<1x64xf32> to vector<64x64xf32>
    %22 = arith.subf %14, %21 : vector<64x64xf32>
    %23 = math.exp %22 : vector<64x64xf32>
    %24 = arith.truncf %23 : vector<64x64xf32> to vector<64x64xbf16>
    %cst_13 = arith.constant dense<0.000000e+00> : vector<33x64xf32>
    %25 = tpu.matmul %12, %24, %cst_13 {dimension_numbers = #tpu.dot_dimension_numbers<[1], [0], [0], [1], [0, 0, 1, 1], [], []>} : vector<33x64xbf16>, vector<64x64xbf16>, vector<33x64xf32> -> vector<33x64xf32>
    %c0_14 = arith.constant 0 : index
    %c0_15 = arith.constant 0 : index
    %26 = vector.load %arg12[%c0_14, %c0_15] : memref<33x64xf32, #tpu.memory_space<vmem>>, vector<33x64xf32>
    %27 = vector.broadcast %20 : vector<1x64xf32> to vector<33x64xf32>
    %28 = arith.mulf %27, %26 : vector<33x64xf32>
    %29 = arith.addf %28, %25 : vector<33x64xf32>
    %c0_16 = arith.constant 0 : index
    %c0_17 = arith.constant 0 : index
    %30 = vector.load %arg12[%c0_16, %c0_17] : memref<33x64xf32, #tpu.memory_space<vmem>>, vector<33x64xf32>
    tpu.vector_store %arg12[%c0_16, %c0_17], %29 {strides = array<i32>} : memref<33x64xf32, #tpu.memory_space<vmem>>, vector<33x64xf32>,
    %c0_18 = arith.constant 0 : index
    %c0_19 = arith.constant 0 : index
    %31 = vector.load %arg11[%c0_18, %c0_19] : memref<1x64xf32, #tpu.memory_space<vmem>>, vector<1x64xf32>
    tpu.vector_store %arg11[%c0_18, %c0_19], %18 {strides = array<i32>} : memref<1x64xf32, #tpu.memory_space<vmem>>, vector<1x64xf32>,
    %c0_i32_20 = arith.constant 0 : i32
    %32 = arith.cmpi eq, %arg2, %c0_i32_20 : i32
    %33 = arith.extui %32 : i1 to i32
    %c0_i32_21 = arith.constant 0 : i32
    %34 = arith.cmpi ne, %33, %c0_i32_21 : i32
    scf.if %34 {
      %c0_22 = arith.constant 0 : index
      %c0_23 = arith.constant 0 : index
      %35 = vector.load %arg12[%c0_22, %c0_23] : memref<33x64xf32, #tpu.memory_space<vmem>>, vector<33x64xf32>
      %36 = vector.extract_strided_slice %35 {offsets = [32, 0], sizes = [1, 64], strides = [1, 1]} : vector<33x64xf32> to vector<1x64xf32>
      %37 = tpu.reciprocal %36 {approx = true} : vector<1x64xf32> -> vector<1x64xf32>
      %38 = vector.extract_strided_slice %35 {offsets = [0, 0], sizes = [32, 64], strides = [1, 1]} : vector<33x64xf32> to vector<32x64xf32>
      %39 = vector.broadcast %37 : vector<1x64xf32> to vector<32x64xf32>
      %40 = arith.mulf %38, %39 : vector<32x64xf32>
      %c0_24 = arith.constant 0 : index
      %c0_25 = arith.constant 0 : index
      %c0_26 = arith.constant 0 : index
      %41 = vector.load %arg9[%c0_24, %c0_25, %c0_26] : memref<1x32x64xf32, #tpu.memory_space<vmem>>, vector<1x32x64xf32>
      %42 = vector.shape_cast %41 : vector<1x32x64xf32> to vector<32x64xf32>
      %43 = vector.shape_cast %40 : vector<32x64xf32> to vector<1x32x64xf32>
      tpu.vector_store %arg9[%c0_24, %c0_25, %c0_26], %43 {strides = array<i32>} : memref<1x32x64xf32, #tpu.memory_space<vmem>>, vector<1x32x64xf32>,
    } else {
    }
    return
  }
  func.func @transform_0(%arg0: i32, %arg1: i32, %arg2: i32) -> (i32, i32, i32) {
    %c0_i32 = arith.constant 0 : i32
    %c0_i32_0 = arith.constant 0 : i32
    return %arg0, %c0_i32, %arg1 : i32, i32, i32
  }
  func.func @transform_1(%arg0: i32, %arg1: i32, %arg2: i32) -> (i32, i32, i32) {
    %c0_i32 = arith.constant 0 : i32
    %c0_i32_0 = arith.constant 0 : i32
    return %arg0, %c0_i32, %arg2 : i32, i32, i32
  }
  func.func @transform_2(%arg0: i32, %arg1: i32, %arg2: i32) -> (i32, i32) {
    %c0_i32 = arith.constant 0 : i32
    %c0_i32_0 = arith.constant 0 : i32
    %c0_i32_1 = arith.constant 0 : i32
    return %c0_i32, %c0_i32_0 : i32, i32
  }
  func.func @transform_3(%arg0: i32, %arg1: i32, %arg2: i32) -> (i32, i32) {
    %c0_i32 = arith.constant 0 : i32
    %c0_i32_0 = arith.constant 0 : i32
    %c0_i32_1 = arith.constant 0 : i32
    return %c0_i32, %c0_i32_0 : i32, i32
  }
  func.func @transform_4(%arg0: i32, %arg1: i32, %arg2: i32) -> (i32, i32) {
    %c0_i32 = arith.constant 0 : i32
    %c0_i32_0 = arith.constant 0 : i32
    %c0_i32_1 = arith.constant 0 : i32
    return %c0_i32, %c0_i32_0 : i32, i32
  }
  func.func @transform_5(%arg0: i32, %arg1: i32, %arg2: i32) -> (i32, i32) {
    %c0_i32 = arith.constant 0 : i32
    %c0_i32_0 = arith.constant 0 : i32
    %c0_i32_1 = arith.constant 0 : i32
    return %c0_i32, %c0_i32_0 : i32, i32
  }
  func.func @transform_6(%arg0: i32, %arg1: i32, %arg2: i32) -> (i32, i32, i32) {
    %c0_i32 = arith.constant 0 : i32
    %c0_i32_0 = arith.constant 0 : i32
    return %arg0, %c0_i32, %arg1 : i32, i32, i32
  }
}

</mosaic_0001>

<bundles_post_ra>
// kernel: tpu_custom_call.1
= control target key start
LH: loop header
LB: loop body
LE: loop exit
PB: predicated region body
PF: predicated region fallthrough
CT: control target
= control target key end

     0   :  { %11 = vsyncpa [#allocation6], 0  ;;  %s1726_s0 = inlined_call_operand.vmem [shape: f32[2,4,64], index: 0, kind: input, shape index: {}]   ;;  %s1727_s1 = inlined_call_operand.vmem [shape: f32[2,4,64], index: 1, kind: input, shape index: {}]   ;;  %s1728_s2 = inlined_call_operand.vmem [shape: f32[32,4], index: 2, kind: input, shape index: {}]   ;;  %s1729_s3 = inlined_call_operand.vmem [shape: f32[32,1], index: 3, kind: input, shape index: {}]   ;;  %s1730_s4 = inlined_call_operand.vmem [shape: f32[65,4], index: 4, kind: input, shape index: {}]   ;;  %s1731_s5 = inlined_call_operand.vmem [shape: f32[65,1], index: 5, kind: input, shape index: {}]   ;;  %s1732_s6 = inlined_call_operand.hbm [shape: f32[2,32,64], index: 6, kind: output, shape index: {}]  }
   0x1   :  { %13 = vsyncpa [#allocation6 + $0x1], 0  ;;  %s1424_s21 = smov 0   ;;  %s1426_s22 = smov 0  }
   0x2   :  { %s1428_s23 = smov 0   ;;  %s1430_s24 = smov 0  }
   0x3   :  { %s1432_s25 = smov 0   ;;  %s1434_s26 = smov 0  }
   0x4 LB: > { %s1076_s27 = sadd.s32 4294967295, %s1380_s26   ;;  %s1077_s28 = sadd.s32 4294967294, %s1380_s26   ;;  %s1380_s26 = sphi %s1434_s26, %s19_s26   ;;  %s1376_s25 = sphi %s1432_s25, %s1739_s25   ;;  %s1372_s24 = sphi %s1430_s24, %s1738_s24   ;;  %s1368_s23 = sphi %s1428_s23, %s1737_s23   ;;  %s1364_s22 = sphi %s1426_s22, %s1736_s22   ;;  %s1360_s21 = sphi %s1424_s21, %s1735_s21  }
   0x5   : > { %s38_s29 = sadd.s32 1, %s1376_s25  ;;  %s187_s30 = sadd.s32 1, %s1368_s23 }
   0x6   : > { %p40_p0 = scmp.ge.s32.totalorder %s38_s29, 2  ;;  %p197_p1 = scmp.ne.s32.totalorder %s1368_s23, %s1364_s22 }
   0x7   : > { %p198_p2 = scmp.eq.s32.totalorder %s1076_s27, 1  ;;  %p203_p3 = scmp.ne.s32.totalorder %s1364_s22, %s1360_s21 }
   0x8   : > { %s1741_s29 = smov (%p40_p0, %s38_s29), 0  ;;  %p204_p5 = scmp.eq.s32.totalorder %s1077_s28, 1 }
   0x9   : > { %p1464_p4 = por %p198_p2, %p197_p1  ;;  %s182_s8 = ssub.s32 %s1376_s25, %s1741_s29 }
   0xa   : > { %p1080_p6 = scmp.ge.s32.totalorder %s1380_s26, 1  ;;  %p185_p7 = scmp.eq.s32.totalorder %s182_s8, 0 }
   0xb   : > { %p1471_p8 = por %p204_p5, %p203_p3  ;;  %p254_p9 = scmp.lt.s32.totalorder %s1380_s26, 3 }
   0xc   : > { %s1477_s10 = scalar_select %p185_p7, %s1368_s23, %s187_s30  }
   0xd   : > { %p255_p10 = pnand %p1080_p6, %p254_p9 }
   0xe   : > { %p293_p11 = scmp.lt.s32.totalorder (!%p255_p10), %s1372_s24, 1  ;;  %s1121_s17 = sshll.u32 (!%p255_p10), %s1372_s24, 9 }
   0xf   : > { %258 = sbr.rel (%p255_p10) target bundleno = 861 (0x35d), region = 44  ;;  %s1386_s8 = smov (!%p255_p10), [#allocation5]  }
  0x10   : > { %s1308_s11 = sshll.u32 (!%p255_p10), %s1386_s8, 4  ;;  %s1309_s11 = int_to_ptr.vmem [resolvable:$false] %s1308_s11 }
  0x11   : > { %s1310_s12 = scalar_lea.vmem (!%p255_p10), %s1309_s11, 1024 }
  0x14   : > { %v313_v0 = vld [vmem:[%s1728_s2] sm:$0xff]  ;;  %vm341_vm0 = vcmask 31744   ;;  %s294_s13 = scalar_select %p293_p11, %s1372_s24, 1  ;;  %v1382_v1 = vmov 0   ;;  %vm354_vm1 = vcmask 1043456   ;;  %v484_v2 = vld [vmem:[%s1731_s5 + $0x10] sm:$0xff] }
  0x15   : > { %1152 = vmatprep.mubr.msk.f32.mxu1 %vm341_vm0, %v313_v0  ;;  %1281 = vset.pattern.permute.xlu1 %v1382_v1  ;;  %v482_v3 = vld [vmem:[%s1731_s5] sm:$0xff]  ;;  %v314_v5 = vld [vmem:[%s1728_s2 + $0x8] sm:$0xff]  ;;  %v315_v7 = vld [vmem:[%s1728_s2 + $0x10] sm:$0xff]  ;;  %v1383_v10 = vmov 0.0   ;;  %vm1384_vm2 = vmmov 0   ;;  %vm459_vm3 = vcmask 519168  }
  0x16   : > { %1280 = vset.pattern.permute.xlu0 %v1382_v1  ;;  %s1082_s14 = sshll.u32 %s294_s13, 2  ;;  %503 = vperm.xlu1 %1281, %v484_v2   ;;  %v485_v8 = vld [vmem:[%s1731_s5 + $0x18] sm:$0xff]  ;;  %v483_v9 = vld [vmem:[%s1731_s5 + $0x8] sm:$0xff]  ;;  %v319_v13 = vld [vmem:[%s1729_s3 + $0x10] sm:$0xff]  ;;  %vm466_vm4 = vcmask 523264   ;;  %vm715_vm5 = vcmask 261120  }
  0x17   : > { %s299_s19 = scalar_lea.vmem %s1726_s0, %s1082_s14  ;;  %s306_s28 = scalar_lea.vmem %s1727_s1, %s1082_s14  ;;  %493 = vperm.xlu0 %1280, %v482_v3   ;;  %v316_v11 = vld [vmem:[%s1728_s2 + $0x18] sm:$0xff]  ;;  %v473_v14 = vld [vmem:[%s1730_s4] sm:$0xff]  ;;  %v318_v15 = vld [vmem:[%s1729_s3 + $0x8] sm:$0xff]  ;;  %467 = vst.msk [vmem:[#allocation4] sm:$0xff] %vm466_vm4, %v1383_v10  ;;  %vm464_vm6 = vcmask 516096  }
  0x18   : > { %v312_v4 = vld [vmem:[%s299_s19] sm:$0xf]  ;;  %v320_v12 = vld [vmem:[%s1729_s3 + $0x18] sm:$0xff]  ;;  %v474_v17 = vld [vmem:[%s1730_s4 + $0x8] sm:$0xff]  ;;  %468 = vst.msk [vmem:[#allocation4 + $0x8] sm:$0xff] %vm466_vm4, %v1383_v10  ;;  %s290_s14 = sand.u32 1, %s1364_s22  }
  0x19   : > { %1150 = vmatprep.subr.msk.mxu1 %vm354_vm1, %v312_v4  ;;  %v472_v6 = vld [vmem:[%s306_s28] sm:$0xf]  ;;  %v475_v19 = vld [vmem:[%s1730_s4 + $0x10] sm:$0xff]  ;;  %v487_v20 = vld [vmem:[%s1731_s5 + $0x28] sm:$0xff]  ;;  %469 = vst.msk [vmem:[#allocation4 + $0x10] sm:$0xff] %vm466_vm4, %v1383_v10  ;;  %s1081_s16 = sshll.u32 %s290_s14, 5  ;;  %s1673_s28 = scalar_lea.hbm %s1732_s6, %s1121_s17 }
  0x1a   : > { %1151 = vmatpush3.msk.msra.mxu1 %vm354_vm1, %v312_v4  ;;  %508 = vperm.xlu1 %1281, %v485_v8   ;;  %v317_v16 = vld [vmem:[%s1729_s3] sm:$0xff]  ;;  %v476_v21 = vld [vmem:[%s1730_s4 + $0x18] sm:$0xff]  ;;  %v488_v22 = vld [vmem:[%s1731_s5 + $0x30] sm:$0xff]  ;;  %470 = vst.msk [vmem:[#allocation4 + $0x18] sm:$0xff] %vm466_vm4, %v1383_v10  ;;  %s292_s18 = scalar_lea.vmem [#allocation5], %s1081_s16  ;;  %s1681_s24 = scalar_lea.sflag [#allocation6], %s290_s14 }
  0x1b   : > { %1153 = vmatmul.mubr.msk.f32.vlgmr.msra.gmra.mxu1 %vm341_vm0, %v314_v5  ;;  %1158 = vmatprep.subr.mxu1 %v1383_v10  ;;  %v486_v18 = vld [vmem:[%s1731_s5 + $0x20] sm:$0xff]  ;;  %v489_v24 = vld [vmem:[%s1731_s5 + $0x38] sm:$0xff]  ;;  %v478_v25 = vld [vmem:[%s1730_s4 + $0x28] sm:$0xff]  ;;  %471 = vst.msk [vmem:[#allocation4 + $0x20] sm:$0x1] %vm464_vm6, %v1383_v10  ;;  %s983_s19 = sshll.u32 %s292_s18, 4  ;;  %s1675_s19 = int_to_ptr.vmem [resolvable:$true] %s983_s19 }
  0x1c   : > { %1159 = vmatpush3.msk.msra.mxu1 %vm354_vm1, %v472_v6  ;;  %1155 = vmatprep.mubr.msk.f32.mxu1 %vm341_vm0, %v315_v7  ;;  %v477_v23 = vld [vmem:[%s1730_s4 + $0x20] sm:$0xff]  ;;  %v479_v27 = vld [vmem:[%s1730_s4 + $0x30] sm:$0xff]  ;;  %v480_v28 = vld [vmem:[%s1730_s4 + $0x38] sm:$0xff]  ;;  %s1304_s30 = scalar_lea.vmem %s1675_s19, 512  ;;  %p1311_p1 = scmp.lt.s32.totalorder %s1675_s19, %s1309_s11 }
  0x1d   : > { %498 = vperm.xlu0 %1280, %v483_v9   ;;  %v490_v26 = vld [vmem:[%s1731_s5 + $0x40] sm:$0x1]  ;;  %p1305_p12 = scmp.ne.s32.totalorder %s1675_s19, %s1304_s30  ;;  %p1312_p2 = scmp.lt.s32.totalorder %s1310_s12, %s1304_s30 }
  0x1e   : > { %338 = vperm.xlu1 %1281, %v320_v12   ;;  %v481_v29 = vld [vmem:[%s1730_s4 + $0x40] sm:$0x1] }
  0x1f   : > { %1156 = vmatmul.mubr.msk.f32.gmra.mxu1 %vm341_vm0, %v316_v11  ;;  %p1306_p13 = pnand %p1305_p12, %p1464_p4  ;;  %p1313_p3 = por %p1312_p2, %p1311_p1 }
  0x20   : > { %1160 = vmatprep.mubr.msk.f32.mxu1 %vm1384_vm2, %v1383_v10 }
  0x21   : > { %333 = vperm.xlu0 %1280, %v319_v13   ;;  %p1307_p0 = pneg %p1306_p13 }
  0x22   : > { %328 = vperm.xlu1 %1281, %v318_v15  }
  0x23   : > { %1161 = vmatmul.mubr.msk.f32.vlgmr.msra.gmra.mxu1 %vm341_vm0, %v473_v14  ;;  %p1314_p5 = pnand %p1313_p3, %p1307_p0 }
  0x24   : > { %1163 = vmatprep.mubr.msk.f32.mxu1 %vm1384_vm2, %v1383_v10 }
  0x25   : > { %323 = vperm.xlu0 %1280, %v317_v16  }
  0x26   : > { %513 = vperm.xlu1 %1281, %v486_v18  }
  0x27   : > { %1164 = vmatmul.mubr.msk.f32.gmra.mxu1 %vm341_vm0, %v474_v17 }
  0x28   : > { %1166 = vmatprep.mubr.msk.f32.mxu1 %vm1384_vm2, %v1383_v10 }
  0x2a   : > { %518 = vperm.xlu1 %1281, %v487_v20  }
  0x2b   : > { %1167 = vmatmul.mubr.msk.f32.gmra.mxu1 %vm341_vm0, %v475_v19 }
  0x2c   : > { %1169 = vmatprep.mubr.msk.f32.mxu1 %vm1384_vm2, %v1383_v10 }
  0x2e   : > { %523 = vperm.xlu1 %1281, %v488_v22  }
  0x2f   : > { %1170 = vmatmul.mubr.msk.f32.gmra.mxu1 %vm341_vm0, %v476_v21 }
  0x30   : > { %1172 = vmatprep.mubr.msk.f32.mxu1 %vm1384_vm2, %v1383_v10 }
  0x32   : > { %528 = vperm.xlu1 %1281, %v489_v24  }
  0x33   : > { %1173 = vmatmul.mubr.msk.f32.gmra.mxu1 %vm341_vm0, %v477_v23 }
  0x34   : > { %1175 = vmatprep.mubr.msk.f32.mxu1 %vm1384_vm2, %v1383_v10 }
  0x36   : > { %533 = vperm.xlu1 %1281, %v490_v26  }
  0x37   : > { %1176 = vmatmul.mubr.msk.f32.gmra.mxu1 %vm341_vm0, %v478_v25 }
  0x38   : > { %1178 = vmatprep.mubr.msk.f32.mxu1 %vm1384_vm2, %v1383_v10 }
  0x3b   : > { %1179 = vmatmul.mubr.msk.f32.gmra.mxu1 %vm341_vm0, %v479_v27  ;;  %v1385_v27 = vmov -inf  }
  0x3c   : > { %1181 = vmatprep.mubr.msk.f32.mxu1 %vm1384_vm2, %v1383_v10  ;;  %465 = vst.msk [vmem:[#allocation3] sm:$0x1] %vm464_vm6, %v1385_v27 }
  0x3f   : > { %1182 = vmatmul.mubr.msk.f32.gmra.mxu1 %vm341_vm0, %v480_v28 }
  0x40   : > { %1184 = vmatprep.mubr.msk.f32.mxu1 %vm1384_vm2, %v1383_v10 }
  0x43   : > { %1185 = vmatmul.mubr.msk.f32.gmra.mxu1 %vm341_vm0, %v481_v29 }
  0x91   : > { %v504_v30 = vpop.permute.xlu1 %503 }
  0x92   : > { %v494_v31 = vpop.permute.xlu0 %493 }
  0x95   : > { %v509_v32 = vpop.permute.xlu1 %508 }
  0x98   : > { %v499_v33 = vpop.permute.xlu0 %498 }
  0x99   : > { %v339_v34 = vpop.permute.xlu1 %338 }
  0x9c   : > { %v334_v35 = vpop.permute.xlu0 %333 }
  0x9d   : > { %v329_v36 = vpop.permute.xlu1 %328 }
  0xa0   : > { %v324_v38 = vpop.permute.xlu0 %323 }
  0xa1   : > { %v514_v58 = vpop.permute.xlu1 %513 }
  0xa5   : > { %v519_v3 = vpop.permute.xlu1 %518 }
  0xa9   : > { %v524_v9 = vpop.permute.xlu1 %523 }
  0xad   : > { %v529_v15 = vpop.permute.xlu1 %528 }
  0xdb   : > { %v1154_v37 = vpop.f32.mrf.mxu1 }
  0xdc   : > { %v430_v39 = vadd.f32 %v1154_v37, %v329_v36 }
  0xdd   : > { %v424_v40 = vpop.f32.mrf.mxu1 }
  0xde   : > { %v1118_v41 = vpack.c.bf16 %v430_v39, %v430_v39  ;;  %v425_v42 = vadd.f32 %v424_v40, %v324_v38 }
  0xdf   : > { %v1157_v43 = vpop.f32.mrf.mxu1 }
  0xe0   : > { %461 = vst.msk [vmem:[#allocation2 + $0x4] sm:$0xf] %vm459_vm3, %v1118_v41  ;;  %v1117_v44 = vpack.c.bf16 %v425_v42, %v425_v42  ;;  %v440_v45 = vadd.f32 %v1157_v43, %v339_v34 }
  0xe1   : > { %v434_v46 = vpop.f32.mrf.mxu1 }
  0xe2   : > { %460 = vst.msk [vmem:[#allocation2] sm:$0xf] %vm459_vm3, %v1117_v44  ;;  %v1120_v47 = vpack.c.bf16 %v440_v45, %v440_v45  ;;  %v435_v48 = vadd.f32 %v434_v46, %v334_v35 }
  0xe3   : > { %v634_v49 = vpop.f32.mrf.mxu1 }
  0xe4   : > { %463 = vst.msk [vmem:[#allocation2 + $0xc] sm:$0xf] %vm459_vm3, %v1120_v47  ;;  %v1119_v50 = vpack.c.bf16 %v435_v48, %v435_v48  ;;  %v635_v53 = vadd.f32 %v634_v49, %v494_v31 }
  0xe5   : > { %v1162_v51 = vpop.f32.mrf.mxu1 }
  0xe6   : > { %462 = vst.msk [vmem:[#allocation2 + $0x8] sm:$0xf] %vm459_vm3, %v1119_v50 }
  0xe7   : > { %v639_v52 = vpop.f32.mrf.mxu1 }
  0xe8   : > { %v640_v54 = vadd.f32 %v639_v52, %v499_v33 }
  0xe9   : > { %v1165_v55 = vpop.f32.mrf.mxu1  ;;  %v1283_v62 = vld [vmem:[#allocation2] sm:$0xff]  }
  0xea   : > { %v678_v56 = vpack.c.bf16 %v640_v54, %v635_v53  ;;  %v821_v53 = vlaneseq }
  0xeb   : > { %v644_v57 = vpop.f32.mrf.mxu1 }
  0xec   : > { %687 = vxpose.xlu0.c.b16.start [1/2] (short) (narrow) %v678_v56, 64  ;;  %v645_v63 = vadd.f32 %v644_v57, %v504_v30  ;;  %v822_v56 = vshrl.u32 %v821_v53, 7 }
  0xed   : > { %v1168_v59 = vpop.f32.mrf.mxu1  ;;  %v1282_v60 = vld [vmem:[#allocation2 + $0x8] sm:$0xff]  }
  0xee   : > { %1187 = vmatprep.subr.bf16.mxu0 %v1282_v60 }
  0xef   : > { %v649_v61 = vpop.f32.mrf.mxu1  ;;  %1188 = vmatpush3.bf16.msra.mxu0 %v1282_v60  ;;  %v1640_v60 = vsub.s32 0, %v822_v56 }
  0xf0   : > { %v650_v0 = vadd.f32 %v649_v61, %v509_v32  ;;  %1189 = vmatprep.subr.bf16.mxu0 %v1283_v62 }
  0xf1   : > { %v1171_v1 = vpop.f32.mrf.mxu1 }
  0xf2   : > { %v679_v2 = vpack.c.bf16 %v650_v0, %v645_v63 }
  0xf3   : > { %v654_v4 = vpop.f32.mrf.mxu1  ;;  %1190 = vmatpush3.bf16.msra.mxu0 %v1283_v62 }
  0xf4   : > { %688 = vxpose.xlu0.c.b16.end [2/2] (short) (narrow) %v679_v2, 64  ;;  %1199 = vmatprep.subr.bf16.mxu0 %v1383_v10  ;;  %v1613_v7 = vadd.f32 %v654_v4, %v514_v58  ;;  %v793_v58 = vld [vmem:[#allocation3] sm:$0x1] }
  0xf5   : > { %v1174_v5 = vpop.f32.mrf.mxu1 }
  0xf7   : > { %v659_v6 = vpop.f32.mrf.mxu1 }
  0xf8   : > { %v1615_v8 = vadd.f32 %v659_v6, %v519_v3 }
  0xf9   : > { %v1177_v11 = vpop.f32.mrf.mxu1 }
  0xfa   : > { %v680_v12 = vpack.c.bf16 %v1615_v8, %v1613_v7 }
  0xfb   : > { %v664_v13 = vpop.f32.mrf.mxu1 }
  0xfc   : > { %v1619_v17 = vadd.f32 %v664_v13, %v524_v9 }
  0xfd   : > { %v1180_v14 = vpop.f32.mrf.mxu1 }
  0xff   : > { %v669_v16 = vpop.f32.mrf.mxu1 }
 0x100   : > { %v1621_v18 = vadd.f32 %v669_v16, %v529_v15 }
 0x101   : > { %v1183_v19 = vpop.f32.mrf.mxu1 }
 0x102   : > { %v681_v20 = vpack.c.bf16 %v1621_v18, %v1619_v17  ;;  %v920_v17 = vld [vmem:[#allocation4 + $0x8] sm:$0xff] }
 0x103   : > { %v1625_v21 = vpop.f32.mrf.mxu1 }
 0x105   : > { %v1186_v22 = vpop.f32.mrf.mxu1 }
 0x152   : > { %v695_v23 = vpop.trf.xlu0 }
 0x153   : > { %1191 = vmatprep.mubr.msk.bf16.mxu0 %vm715_vm5, %v695_v23 }
 0x156   : > { %v696_v24 = vpop.trf.xlu0 }
 0x157   : > { %1192 = vmatmul.mubr.msk.bf16.vlgmr.msra.gmra.mxu0 %vm715_vm5, %v696_v24 }
 0x15a   : > { %v697_v25 = vpop.trf.xlu0 }
 0x15b   : > { %1195 = vmatprep.mubr.msk.bf16.mxu0 %vm715_vm5, %v697_v25 }
 0x15e   : > { %v698_v26 = vpop.trf.xlu0 }
 0x15f   : > { %1196 = vmatmul.mubr.msk.bf16.gmra.mxu0 %vm715_vm5, %v698_v26 }
 0x160   : > { %1207 = vmatprep.mubr.msk.bf16.mxu0 %vm1384_vm2, %v1383_v10 }
 0x217   : > { %v1193_v28 = vpop.f32.mrf.mxu0 }
 0x218   : > { %v797_v41 = vsel %vm466_vm4, %v1193_v28, -inf }
 0x219   : > { %v762_v29 = vpop.f32.mrf.mxu0 }
 0x21a   : > { %v795_v42 = vsel %vm466_vm4, %v762_v29, -inf }
 0x21b   : > { %v1194_v30 = vpop.f32.mrf.mxu0 }
 0x21c   : > { %v798_v35 = vsel %vm466_vm4, %v1194_v30, -inf }
 0x21d   : > { %v765_v31 = vpop.f32.mrf.mxu0 }
 0x21e   : > { %v796_v43 = vsel %vm466_vm4, %v765_v31, -inf }
 0x21f   : > { %v1197_v32 = vpop.f32.mrf.mxu0 }
 0x220   : > { %v803_v36 = vsel %vm466_vm4, %v1197_v32, -inf }
 0x221   : > { %v778_v33 = vpop.f32.mrf.mxu0  ;;  %v804_v45 = vmax.f32 %v797_v41, %v803_v36  ;;  %v534_v36 = vpop.permute.xlu1 %533 }
 0x222   : > { %v799_v37 = vsel %vm466_vm4, %v778_v33, -inf }
 0x223   : > { %v1198_v34 = vpop.f32.mrf.mxu0  ;;  %v800_v46 = vmax.f32 %v795_v42, %v799_v37  ;;  %v675_v37 = vadd.f32 %v1625_v21, %v534_v36 }
 0x224   : > { %v805_v38 = vsel %vm466_vm4, %v1198_v34, -inf }
 0x225   : > { %v806_v39 = vmax.f32 %v798_v35, %v805_v38  ;;  %v781_v40 = vpop.f32.mrf.mxu0  ;;  %v682_v38 = vpack.c.bf16 %v675_v37, %v675_v37 }
 0x226   : > { %v801_v44 = vsel %vm466_vm4, %v781_v40, -inf }
 0x227   : > { %v802_v47 = vmax.f32 %v796_v43, %v801_v44  ;;  %v808_v48 = vmax.f32 %v804_v45, %v806_v39  ;;  %v919_v39 = vld [vmem:[#allocation4] sm:$0xff]  ;;  %v921_v43 = vld [vmem:[#allocation4 + $0x10] sm:$0xff] }
 0x229   : > { %v807_v49 = vmax.f32 %v800_v46, %v802_v47  ;;  %v922_v47 = vld [vmem:[#allocation4 + $0x18] sm:$0xff] }
 0x22b   : > { %v809_v50 = vmax.f32 %v807_v49, %v808_v48 }
 0x22d   : > { %v810_v51 = vrot.slane %v809_v50, 4 }
 0x22f   : > { %v811_v52 = vmax.f32 %v809_v50, %v810_v51 }
 0x231   : > { %v812_v54 = vrot.slane %v811_v52, 2 }
 0x233   : > { %v813_v55 = vmax.f32 %v811_v52, %v812_v54  ;;  %v923_v52 = vld [vmem:[#allocation4 + $0x20] sm:$0x1] }
 0x235   : > { %v814_v57 = vrot.slane %v813_v55, 1 }
 0x237   : > { %v815_v59 = vmax.f32 %v813_v55, %v814_v57 }
 0x239   : > { %v816_v61 = vmax.f32 %v793_v58, %v815_v59 }
 0x23b   : > { %v817_v62 = vsub.f32 %v793_v58, %v816_v61  ;;  %v824_v63 = vrot.slane %v816_v61, %v1640_v60  ;;  %946 = vst.msk [vmem:[#allocation3] sm:$0x1] %vm464_vm6, %v816_v61 }
 0x23d   : > { %v831_v0 = vsub.f32 %v781_v40, %v824_v63  ;;  %v832_v1 = vsub.f32 %v1197_v32, %v824_v63  ;;  %v833_v2 = vsub.f32 %v1198_v34, %v824_v63  ;;  %v830_v3 = vsub.f32 %v778_v33, %v824_v63 }
 0x23e   : > { %v828_v9 = vsub.f32 %v1193_v28, %v824_v63  ;;  %v829_v13 = vsub.f32 %v1194_v30, %v824_v63  ;;  %v826_v15 = vsub.f32 %v762_v29, %v824_v63  ;;  %v827_v19 = vsub.f32 %v765_v31, %v824_v63 }
 0x23f   : > { %v846_v4 = vmul.f32 1.442695, %v832_v1  ;;  %v848_v5 = vmul.f32 1.442695, %v833_v2  ;;  %v844_v6 = vmul.f32 1.442695, %v831_v0 }
 0x240   : > { %v842_v11 = vmul.f32 1.442695, %v830_v3  ;;  %v838_v14 = vmul.f32 1.442695, %v828_v9  ;;  %v840_v16 = vmul.f32 1.442695, %v829_v13 }
 0x241   : > { %1284 = vpow2.f32 %v846_v4  ;;  %v834_v22 = vmul.f32 1.442695, %v826_v15  ;;  %v836_v23 = vmul.f32 1.442695, %v827_v19  ;;  %v818_v7 = vmul.f32 1.442695, %v817_v62 }
 0x242   : > { %1286 = vpow2.f32 %v848_v5 }
 0x243   : > { %1288 = vpow2.f32 %v844_v6 }
 0x244   : > { %1290 = vpow2.f32 %v842_v11 }
 0x245   : > { %1292 = vpow2.f32 %v838_v14 }
 0x246   : > { %1294 = vpow2.f32 %v840_v16 }
 0x247   : > { %1296 = vpow2.f32 %v834_v22 }
 0x248   : > { %1298 = vpow2.f32 %v836_v23 }
 0x249   : > { %1300 = vpow2.f32 %v818_v7 }
 0x24e   : > { %v1285_v24 = vpop.eup %1284 }
 0x24f   : > { %v1287_v25 = vpop.eup %1286 }
 0x250   : > { %v1289_v26 = vpop.eup %1288  ;;  %v853_v27 = vpack.c.bf16 %v1287_v25, %v1285_v24 }
 0x251   : > { %v1291_v28 = vpop.eup %1290 }
 0x252   : > { %1200 = vmatpush3.bf16.msra.mxu0 %v853_v27  ;;  %v1293_v30 = vpop.eup %1292  ;;  %v852_v32 = vpack.c.bf16 %v1289_v26, %v1291_v28 }
 0x253   : > { %1201 = vmatprep.subr.bf16.mxu0 %v1383_v10  ;;  %v1295_v29 = vpop.eup %1294 }
 0x254   : > { %v1297_v31 = vpop.eup %1296  ;;  %v851_v33 = vpack.c.bf16 %v1295_v29, %v1293_v30 }
 0x255   : > { %v1299_v34 = vpop.eup %1298 }
 0x256   : > { %1202 = vmatpush3.bf16.msra.mxu0 %v852_v32  ;;  %v850_v35 = vpack.c.bf16 %v1299_v34, %v1297_v31  ;;  %v1301_v8 = vpop.eup %1300 }
 0x257   : > { %1203 = vmatprep.subr.bf16.mxu0 %v1383_v10 }
 0x25a   : > { %1204 = vmatpush3.bf16.msra.mxu0 %v851_v33 }
 0x25b   : > { %1205 = vmatprep.subr.bf16.mxu0 %v1383_v10 }
 0x25e   : > { %1206 = vmatpush3.bf16.msra.mxu0 %v850_v35 }
 0x261   : > { %1208 = vmatmul.mubr.msk.bf16.vlgmr.msra.gmra.mxu0 %vm466_vm4, %v680_v12  ;;  %v928_v12 = vrot.slane %v1301_v8, %v1640_v60 }
 0x262   : > { %1211 = vmatprep.mubr.msk.bf16.mxu0 %vm1384_vm2, %v1383_v10 }
 0x263   : > { %v930_v40 = vmul.f32 %v928_v12, %v919_v39  ;;  %v931_v42 = vmul.f32 %v928_v12, %v920_v17  ;;  %v932_v45 = vmul.f32 %v928_v12, %v921_v43  ;;  %v933_v50 = vmul.f32 %v928_v12, %v922_v47 }
 0x264   : > { %v934_v55 = vmul.f32 %v928_v12, %v923_v52 }
 0x269   : > { %1212 = vmatmul.mubr.msk.bf16.gmra.mxu0 %vm466_vm4, %v681_v20 }
 0x26a   : > { %1215 = vmatprep.mubr.msk.bf16.mxu0 %vm1384_vm2, %v1383_v10 }
 0x271   : > { %1216 = vmatmul.mubr.msk.bf16.gmra.mxu0 %vm466_vm4, %v682_v38 }
 0x321   : > { %v897_v41 = vpop.f32.mrf.mxu0 }
 0x322   : > { %v935_v18 = vadd.f32 %v930_v40, %v897_v41 }
 0x323   : > { %v1209_v20 = vpop.f32.mrf.mxu0 }
 0x324   : > { %940 = vst.msk [vmem:[#allocation4] sm:$0xff] %vm466_vm4, %v935_v18 }
 0x325   : > { %v900_v10 = vpop.f32.mrf.mxu0 }
 0x326   : > { %v936_v21 = vadd.f32 %v931_v42, %v900_v10 }
 0x327   : > { %v1210_v44 = vpop.f32.mrf.mxu0 }
 0x328   : > { %941 = vst.msk [vmem:[#allocation4 + $0x8] sm:$0xff] %vm466_vm4, %v936_v21 }
 0x329   : > { %v905_v46 = vpop.f32.mrf.mxu0 }
 0x32a   : > { %v937_v48 = vadd.f32 %v932_v45, %v905_v46 }
 0x32b   : > { %v1213_v49 = vpop.f32.mrf.mxu0  ;;  %v950_v0 = vld [vmem:[#allocation4] sm:$0xff] }
 0x32c   : > { %942 = vst.msk [vmem:[#allocation4 + $0x10] sm:$0xff] %vm466_vm4, %v937_v48 }
 0x32d   : > { %v908_v51 = vpop.f32.mrf.mxu0 }
 0x32e   : > { %v938_v53 = vadd.f32 %v933_v50, %v908_v51 }
 0x32f   : > { %v1214_v54 = vpop.f32.mrf.mxu0  ;;  %v951_v2 = vld [vmem:[#allocation4 + $0x8] sm:$0xff] }
 0x330   : > { %943 = vst.msk [vmem:[#allocation4 + $0x18] sm:$0xff] %vm466_vm4, %v938_v53 }
 0x331   : > { %v913_v56 = vpop.f32.mrf.mxu0 }
 0x332   : > { %v939_v57 = vadd.f32 %v934_v55, %v913_v56 }
 0x333   : > { %v1217_v58 = vpop.f32.mrf.mxu0  ;;  %v952_v3 = vld [vmem:[#allocation4 + $0x10] sm:$0xff] }
 0x334   : > { %945 = vst.msk [vmem:[#allocation4 + $0x20] sm:$0x1] %vm464_vm6, %v939_v57 }
 0x335   : > { %v916_v59 = vpop.f32.mrf.mxu0 }
 0x337   : > { %v1218_v61 = vpop.f32.mrf.mxu0  ;;  %v953_v4 = vld [vmem:[#allocation4 + $0x18] sm:$0xff] }
 0x33b   : > { %v954_v62 = vld [vmem:[#allocation4 + $0x20] sm:$0x1] }
 0x33c   : > { %1302 = vrcp.f32 %v954_v62 }
 0x349   : > { %v1303_v63 = vpop.eup %1302 }
 0x34a   : > { %v959_v1 = vrot.slane %v1303_v63, %v1640_v60 }
 0x34c   : > { %v960_v5 = vmul.f32 %v959_v1, %v950_v0  ;;  %v961_v6 = vmul.f32 %v959_v1, %v951_v2  ;;  %v962_v9 = vmul.f32 %v959_v1, %v952_v3  ;;  %v963_v11 = vmul.f32 %v959_v1, %v953_v4 }
 0x34e   : > { %964 = vst.msk [vmem:[%s292_s18] sm:$0xff] %vm466_vm4, %v960_v5  ;;  %965 = vst.msk [vmem:[%s292_s18 + $0x8] sm:$0xff] %vm466_vm4, %v961_v6 }
 0x34f   : > { %966 = vst.msk [vmem:[%s292_s18 + $0x10] sm:$0xff] %vm466_vm4, %v962_v9  ;;  %967 = vst.msk [vmem:[%s292_s18 + $0x18] sm:$0xff] %vm466_vm4, %v963_v11 }
 0x350   : > { %1317 = shalt.err (!%p1314_p5)
}
 0x351   : > { %s1318_s13 = scalar_lea.hbm %s1673_s28, 512  ;;  %s1322_s16 = scalar_lea.hbm %s1732_s6, 1024 }
 0x352   : > { %p1319_p6 = scmp.ne.s32.totalorder %s1673_s28, %s1318_s13  ;;  %p1323_p10 = scmp.lt.s32.totalorder %s1673_s28, %s1732_s6 }
 0x353   : > { %p1324_p11 = scmp.lt.s32.totalorder %s1322_s16, %s1318_s13 }
 0x354   : > { %p1320_p7 = pnand %p1319_p6, %p1464_p4 }
 0x355   : > { %p1325_p12 = por %p1324_p11, %p1323_p10 }
 0x356   : > { %p1321_p9 = pneg %p1320_p7 }
 0x358   : > { %p1326_p13 = pnand %p1325_p12, %p1321_p9 }
 0x35a   : > { %1329 = shalt.err (!%p1326_p13)
}
 0x35b   : > { %s1387_s20 = smov 128   ;;  %s1388_s27 = smov 8  }
 0x35c   : > { %1219 = dma.vmem_to_hbm [thread:$0]  (%p1464_p4), %s1675_s19, 512, %s1673_s28, %s1681_s24, %s1387_s20, %s1387_s20, %s1388_s27  }
 0x35d PF: > { %p1225_p0 = scmp.ge.s32.totalorder %s1380_s26, 2  ;;  %s998_s30 = sand.u32 1, %s1360_s21  }
 0x35e   : > { %s999_s8 = scalar_lea.sflag [#allocation6], %s998_s30 }
 0x35f   : > { %p1222_p1 = pnand %p1225_p0, %p1471_p8 }
 0x361   : > { %p1223_p2 = pneg %p1222_p1 }
 0x363   : > { %1355 = dma.done.wait (%p1223_p2), %s999_s8, 512  }
 0x364   : > { %1357 = vsyncadd (%p1223_p2), %s999_s8, 4294966784  ;;  %s19_s26 = sadd.s32 1, %s1380_s26   ;;  %s1735_s21 = smov %s1364_s22 }
 0x365   : > { %p16_p3 = scmp.ge.s32.totalorder %s19_s26, 4   ;;  %s1736_s22 = smov %s1368_s23 }
 0x366   : > { %s1737_s23 = smov %s1477_s10  ;;  %s1738_s24 = smov %s1376_s25 }
 0x367   : > { %s1739_s25 = smov %s1741_s29  ;;  %18 = sbr.rel (!%p16_p3) target bundleno = 4 (0x4), region = 90 }
 0x36c   :  { %1004 = vsyncpa [#allocation6], 1 }
 0x36d   :  { %1006 = vsyncpa [#allocation6 + $0x1], 1 }

</bundles_post_ra>
